<compile_context>
chip_gen: v7x
topology: tpu7x:2x2x1
jax: 0.10.0
libtpu: 0.0.40
codegen_flags: <defaults>
</compile_context>

<pallas_src>
import functools

import jax
import jax.numpy as jnp
from jax import lax
from jax.experimental import pallas as pl
from jax.experimental.pallas import tpu as pltpu


# ----------------------------------------------------------------------------
# VMEM budgeting (review: size tiles for v7x's 64 MiB, raise the scoped limit)
# ----------------------------------------------------------------------------
def _default_vmem_limit():
    try:
        cap = int(pltpu.get_tpu_info().vmem_capacity_bytes)
        return min((cap * 3) // 4, 96 * 1024 * 1024)
    except Exception:
        return 48 * 1024 * 1024          # safe on every gen (v7x = 64 MiB/TC)


_VMEM_LIMIT_BYTES = _default_vmem_limit()
_TILE_BUDGET_BYTES = _VMEM_LIMIT_BYTES // 2   # budget for double-buffered tiles


def _block_spec(block_shape, index_map, buffers=None):
    """BlockSpec with optional deeper multi-buffering (graceful fallback)."""
    if buffers is not None and buffers > 2 and hasattr(pl, "Buffered"):
        try:
            return pl.BlockSpec(block_shape, index_map,
                                pipeline_mode=pl.Buffered(buffers))
        except TypeError:
            pass
    return pl.BlockSpec(block_shape, index_map)


# ----------------------------------------------------------------------------
# Kernel 1: fused multi-filter causal Conv1d + bias + ReLU (channels-last out)
# ----------------------------------------------------------------------------
def _conv_relu_kernel(x_ref, w_ref, b_ref, o_ref, *, K, Cin, unfold, transpose_in):
    """x_ref: (Bt, L, Cin) [or (Bt, Cin, L) if transpose_in]; w_ref: (K*Cin, Cout);
    b_ref: (1, Cout) f32; o_ref: (Bt, L, Cout)."""
    Bt = x_ref.shape[0]
    L = o_ref.shape[1]
    Cout = o_ref.shape[2]
    cdt = w_ref.dtype

    x = x_ref[...]
    if transpose_in:
        # First layer reads NCL tiles directly (no wrapper-side HBM transpose);
        # transpose in f32 for a robust lowering, then drop to compute dtype.
        x = jnp.transpose(x.astype(jnp.float32), (0, 2, 1))
    x = x.astype(cdt)                                            # (Bt, L, Cin)

    # Causal left pad built in-register (no HBM pad round trip).
    if K > 1:
        xpad = jnp.concatenate(
            [jnp.zeros((Bt, K - 1, Cin), cdt), x], axis=1)       # (Bt, L+K-1, Cin)
    else:
        xpad = x

    if unfold:
        # Small Cin: one wide (K*Cin) contraction keeps the MXU fed.
        cols = [xpad[:, k:k + L, :] for k in range(K)]
        lhs = cols[0] if K == 1 else jnp.concatenate(cols, axis=-1)
        acc = jnp.dot(lhs.reshape(Bt * L, K * Cin), w_ref[...],
                      preferred_element_type=jnp.float32)        # (Bt*L, Cout)
    else:
        # Large Cin: K accumulated dots over the single padded buffer — avoids
        # materialising a K× copy of the tile (review: VMEM / copy traffic ×K).
        acc = jnp.zeros((Bt * L, Cout), jnp.float32)
        for k in range(K):
            tap = xpad[:, k:k + L, :].reshape(Bt * L, Cin)
            acc = acc + jnp.dot(tap, w_ref[k * Cin:(k + 1) * Cin, :],
                                preferred_element_type=jnp.float32)

    acc = acc + b_ref[...]
    o_ref[...] = jnp.maximum(acc, 0.0).reshape(Bt, L, Cout).astype(o_ref.dtype)


def conv_layer(x, convs, *, compute_dtype=jnp.float32, batch_block=16,
               input_is_ncl=False):
    """x: (B, L, Cin) [or (B, Cin, L) if input_is_ncl]; convs: list of
    (w (F, Cin, Kf), b (F,)) -> (B, L, F*len(convs)) in compute_dtype."""
    if input_is_ncl:
        B, Cin, L = x.shape
    else:
        B, L, Cin = x.shape
    Kmax = max(int(w.shape[2]) for w, _ in convs)

    w_parts, b_parts = [], []
    for w, b in convs:
        Kf = int(w.shape[2])
        # Place the Kf taps at the END of the common K axis (causal alignment).
        w_parts.append(jnp.pad(w, ((0, 0), (0, 0), (Kmax - Kf, 0))))
        b_parts.append(b)
    w_all = jnp.concatenate(w_parts, axis=0)                     # (Cout, Cin, Kmax)
    b_all = jnp.concatenate(b_parts, axis=0)                     # (Cout,)
    Cout = int(w_all.shape[0])

    # Matmul layout matching the kernel's tap order (tap k major, channel ci minor).
    w_mm = jnp.transpose(w_all, (2, 1, 0)).reshape(Kmax * Cin, Cout).astype(compute_dtype)
    b_mm = b_all.reshape(1, Cout).astype(jnp.float32)

    # Batch tile sized against the VMEM budget (double-buffered in + out).
    # NOTE(perf): keep Cout a multiple of 128 at production config for
    # lane-dense (unmasked) stores.
    itemsize = jnp.dtype(compute_dtype).itemsize
    per_row = 2 * L * (Cin + Cout) * itemsize
    bt = max(1, min(batch_block, B, _TILE_BUDGET_BYTES // max(per_row, 1)))
    while B % bt != 0:
        bt -= 1

    unfold = Cin < 128
    in_block = (bt, Cin, L) if input_is_ncl else (bt, L, Cin)
    kernel = functools.partial(_conv_relu_kernel, K=Kmax, Cin=Cin,
                               unfold=unfold, transpose_in=input_is_ncl)
    return pl.pallas_call(
        kernel,
        out_shape=jax.ShapeDtypeStruct((B, L, Cout), compute_dtype),
        grid=(B // bt,),
        in_specs=[
            pl.BlockSpec(in_block, lambda i: (i, 0, 0)),
            pl.BlockSpec((Kmax * Cin, Cout), lambda i: (0, 0)),
            pl.BlockSpec((1, Cout), lambda i: (0, 0)),
        ],
        out_specs=pl.BlockSpec((bt, L, Cout), lambda i: (i, 0, 0)),
        compiler_params=pltpu.CompilerParams(
            dimension_semantics=("parallel",),
            vmem_limit_bytes=_VMEM_LIMIT_BYTES),
    )(x.astype(compute_dtype), w_mm, b_mm)


# ----------------------------------------------------------------------------
# Kernel 2: gate-fused input projection (hoisted out of the LSTM recurrence)
# ----------------------------------------------------------------------------
def _matmul_bias_kernel(x_ref, w_ref, b_ref, o_ref):
    acc = jnp.dot(x_ref[...].astype(w_ref.dtype), w_ref[...],
                  preferred_element_type=jnp.float32)
    o_ref[...] = (acc + b_ref[...]).astype(o_ref.dtype)


def matmul_bias(x, w, b, *, out_dtype=jnp.float32, row_block=1024, col_block=512):
    """x: (M, K); w: (K, N); b: (1, N) f32 -> (M, N) in out_dtype.
    Tiled over rows AND columns so the resident weight tile fits VMEM."""
    M, Kd = x.shape
    N = w.shape[1]
    tm = M if M <= row_block else row_block
    tn = N if N <= col_block else col_block
    if N > col_block:
        # Keep the double-buffered (Kd, tn) weight tile within budget.
        # TODO(synk): for very large Kd (= model C) add a K-reduction grid axis
        # with an accumulator instead of holding the full contraction resident.
        itemsize = jnp.dtype(w.dtype).itemsize
        while tn > 128 and 2 * Kd * tn * itemsize > _TILE_BUDGET_BYTES // 2:
            tn //= 2
    return pl.pallas_call(
        _matmul_bias_kernel,
        out_shape=jax.ShapeDtypeStruct((M, N), out_dtype),
        grid=(pl.cdiv(M, tm), pl.cdiv(N, tn)),
        in_specs=[
            pl.BlockSpec((tm, Kd), lambda i, j: (i, 0)),
            pl.BlockSpec((Kd, tn), lambda i, j: (0, j)),
            pl.BlockSpec((1, tn), lambda i, j: (0, j)),
        ],
        out_specs=pl.BlockSpec((tm, tn), lambda i, j: (i, j)),
        compiler_params=pltpu.CompilerParams(
            dimension_semantics=("parallel", "parallel"),
            vmem_limit_bytes=_VMEM_LIMIT_BYTES),
    )(x, w, b)


# ----------------------------------------------------------------------------
# Kernel 3: LSTM recurrence (T-blocked grid, persistent h/c scratch, fused gates)
# ----------------------------------------------------------------------------
def _lstm_recurrence_kernel(gx_ref, whh_ref, o_ref, h_sc, c_sc, *, H, R, pool):
    """gx_ref: (R, bn, 4H) precomputed x_t@W_ih+b; whh_ref: (H, 4H);
    o_ref: (R, bn, H)  (or (R, 1, H) if pool); h_sc/c_sc: (bn, H) f32 scratch."""

    @pl.when(pl.program_id(1) == 0)
    def _init():
        h_sc[...] = jnp.zeros_like(h_sc)
        c_sc[...] = jnp.zeros_like(c_sc)

    whh = whh_ref[...]                                   # resident across the T axis
    # Static unroll of R timesteps per grid step: amortises per-grid-step
    # overhead and lets the scheduler overlap step t's gate math (VPU/EUP)
    # with step t+1's MXU push.
    for r in range(R):
        gates = gx_ref[r].astype(jnp.float32) + jnp.dot(
            h_sc[...].astype(whh.dtype), whh,
            preferred_element_type=jnp.float32)          # (bn, 4H)
        i = jax.nn.sigmoid(gates[:, 0 * H:1 * H])
        f = jax.nn.sigmoid(gates[:, 1 * H:2 * H])
        g = jnp.tanh(gates[:, 2 * H:3 * H])
        o = jax.nn.sigmoid(gates[:, 3 * H:4 * H])
        c = f * c_sc[...] + i * g
        h = o * jnp.tanh(c)
        c_sc[...] = c
        h_sc[...] = h
        if pool:
            # Fuse max-pool over the N (= original L) axis into the epilogue.
            o_ref[r] = jnp.max(h, axis=0, keepdims=True)           # (1, H)
        else:
            # Lane-dense (bn, H) store; the single (T,N,H)->(T,H,N) swap is done
            # once outside instead of a per-step identity-matmul transpose.
            o_ref[r] = h.astype(o_ref.dtype)


def lstm_forward(x_tnc, w_ih, w_hh, b_ih, b_hh, hidden_size, *,
                 max_pool_over_time=False, compute_dtype=jnp.float32,
                 n_split=1, time_block=8, gx_buffers=3):
    """x_tnc: (T, N, C) time-major.  Returns (T, H, N) or (T, H) if pooling.
    Set n_split=2 on v7x (non-pooled) to shard the recurrence across both TCs."""
    T, N, C = x_tnc.shape
    H = hidden_size
    wih_t = jnp.transpose(w_ih).astype(compute_dtype)            # (C, 4H) [i|f|g|o]
    whh_t = jnp.transpose(w_hh).astype(compute_dtype)            # (H, 4H)
    bias = (b_ih + b_hh).reshape(1, 4 * H).astype(jnp.float32)

    # Hoisted input projection: one big gate-fused matmul for all timesteps,
    # stored in compute_dtype (halves the per-step gx DMA on the bf16 path).
    gx = matmul_bias(x_tnc.reshape(T * N, C), wih_t, bias,
                     out_dtype=compute_dtype).reshape(T, N, 4 * H)

    # T-axis blocking: R timesteps per grid step.
    R = 1
    for r in range(min(time_block, T), 0, -1):
        if T % r == 0:
            R = r
            break

    # Optional N-axis split (v7x: the 'parallel' axis shards across both TCs).
    bn = N
    if (not max_pool_over_time) and n_split > 1 and N % (n_split * 8) == 0:
        bn = N // n_split
    n_blocks = N // bn
    # TODO(synk): pooled path with bn < N would need a cross-block max reduction.

    kernel = functools.partial(_lstm_recurrence_kernel, H=H, R=R,
                               pool=max_pool_over_time)

    if max_pool_over_time:
        out_shape = jax.ShapeDtypeStruct((T, 1, H), jnp.float32)
        out_spec = pl.BlockSpec((R, 1, H), lambda n, t: (t, 0, 0))
    else:
        out_shape = jax.ShapeDtypeStruct((T, N, H), jnp.float32)
        out_spec = pl.BlockSpec((R, bn, H), lambda n, t: (t, n, 0))

    gx_index = lambda n, t: (t, n, 0)

    def _call(gx_spec):
        return pl.pallas_call(
            kernel,
            out_shape=out_shape,
            grid=(n_blocks, T // R),
            in_specs=[gx_spec,
                      pl.BlockSpec((H, 4 * H), lambda n, t: (0, 0))],
            out_specs=out_spec,
            scratch_shapes=[
                pltpu.VMEM((bn, H), jnp.float32),   # h carried across the T axis
                pltpu.VMEM((bn, H), jnp.float32),   # c carried across the T axis
            ],
            compiler_params=pltpu.CompilerParams(
                dimension_semantics=("parallel", "arbitrary"),
                vmem_limit_bytes=_VMEM_LIMIT_BYTES),
        )(gx, whh_t)

    try:
        # Triple-buffer the only per-step HBM read so the DMA is not exposed
        # on the serial critical path (falls back to default double-buffering).
        out = _call(_block_spec((R, bn, 4 * H), gx_index, buffers=gx_buffers))
    except Exception:
        out = _call(pl.BlockSpec((R, bn, 4 * H), gx_index))

    if max_pool_over_time:
        return out.reshape(T, H)
    # Single layout swap outside the kernel (replaces per-step eye-matmul).
    return jnp.transpose(out, (0, 2, 1))                          # (T, H, N)


# ----------------------------------------------------------------------------
# RCNN module glue (parameter setup + forward)
# ----------------------------------------------------------------------------
class Args:
    def __init__(self, num_layers, filters, filter_num, embedding_dim, cuda=False):
        self.num_layers = num_layers
        self.filters = filters
        self.filter_num = filter_num
        self.embedding_dim = embedding_dim
        self.cuda = cuda


def init_rcnn_params(key, args, embedding_dim, hidden_size):
    params = {'convs': []}
    for layer in range(args.num_layers):
        convs = []
        for filt in args.filters:
            in_channels = (args.embedding_dim if layer == 0
                           else args.filter_num * len(args.filters))
            key, kw, kb = jax.random.split(key, 3)
            bound = 1.0 / (in_channels * filt) ** 0.5
            w = jax.random.uniform(kw, (args.filter_num, in_channels, filt),
                                   jnp.float32, -bound, bound)
            b = jax.random.uniform(kb, (args.filter_num,), jnp.float32, -bound, bound)
            convs.append((w, b))
        params['convs'].append(convs)
    key, k1, k2, k3, k4 = jax.random.split(key, 5)
    bound = 1.0 / hidden_size ** 0.5
    params['w_ih'] = jax.random.uniform(k1, (4 * hidden_size, embedding_dim),
                                        jnp.float32, -bound, bound)
    params['w_hh'] = jax.random.uniform(k2, (4 * hidden_size, hidden_size),
                                        jnp.float32, -bound, bound)
    params['b_ih'] = jax.random.uniform(k3, (4 * hidden_size,), jnp.float32, -bound, bound)
    params['b_hh'] = jax.random.uniform(k4, (4 * hidden_size,), jnp.float32, -bound, bound)
    return params


def rcnn_forward(params, x, hidden_size, max_pool_over_time=False,
                 compute_dtype=jnp.float32, lstm_n_split=1):
    """x: (B, embedding_dim, L) — same NCL layout as the PyTorch module."""
    # Cast once at the boundary; activations cross HBM in compute_dtype.
    act = x.astype(compute_dtype)
    for li, convs in enumerate(params['convs']):
        # Layer 0 reads NCL tiles and transposes in-kernel (no HBM transpose).
        act = conv_layer(act, convs, compute_dtype=compute_dtype,
                         input_is_ncl=(li == 0))                  # (B, L, C')
    # PyTorch quirk: (L,B,C) into a batch_first LSTM => recurrence over B with
    # N=L independent sequences.  Time-major view is (T=B, N=L, C) == act.
    out = lstm_forward(act, params['w_ih'], params['w_hh'],
                       params['b_ih'], params['b_hh'], hidden_size,
                       max_pool_over_time=max_pool_over_time,
                       compute_dtype=compute_dtype, n_split=lstm_n_split)
    return out                                                     # (B,H,L) or (B,H)


# ----------------------------------------------------------------------------
# Pure-JAX reference (correctness check only)
# ----------------------------------------------------------------------------
def ref_forward(params, x, hidden_size, max_pool_over_time=False):
    layer_activ = x.astype(jnp.float32)
    for convs in params['convs']:
        outs = []
        for (w, b) in convs:
            K = w.shape[2]
            xp = jnp.pad(layer_activ, ((0, 0), (0, 0), (K - 1, 0)))
            o = lax.conv_general_dilated(
                xp, w, window_strides=(1,), padding='VALID',
                dimension_numbers=('NCH', 'OIH', 'NCH')) + b[None, :, None]
            outs.append(o)
        layer_activ = jax.nn.relu(jnp.concatenate(outs, axis=1))
    lstm_in = jnp.transpose(layer_activ, (0, 2, 1))                # (T=B, N=L, C)
    H = hidden_size
    w_ih, w_hh = params['w_ih'], params['w_hh']
    bias = params['b_ih'] + params['b_hh']

    def step(carry, x_t):
        h, c = carry
        gates = x_t @ w_ih.T + h @ w_hh.T + bias
        i = jax.nn.sigmoid(gates[:, :H])
        f = jax.nn.sigmoid(gates[:, H:2 * H])
        g = jnp.tanh(gates[:, 2 * H:3 * H])
        o = jax.nn.sigmoid(gates[:, 3 * H:4 * H])
        c = f * c + i * g
        h = o * jnp.tanh(c)
        return (h, c), h

    N = lstm_in.shape[1]
    init = (jnp.zeros((N, H), jnp.float32), jnp.zeros((N, H), jnp.float32))
    _, hs = lax.scan(step, init, lstm_in)                          # (T, N, H)
    out = jnp.transpose(hs, (0, 2, 1))                             # (B, H, L)
    if max_pool_over_time:
        out = jnp.max(out, axis=2)
    return out


# ----------------------------------------------------------------------------
if __name__ == "__main__":
    # embedding_dim must equal filter_num * len(filters) so the original
    # module's LSTM(input_size=embedding_dim) is well-formed after layer > 0.
    B, L = 2, 16
    embedding_dim, hidden_size = 8, 16
    args = Args(num_layers=2, filters=[3, 5], filter_num=4,
                embedding_dim=embedding_dim, cuda=False)
    assert args.filter_num * len(args.filters) == embedding_dim

    key = jax.random.PRNGKey(0)
    key, kx, kp = jax.random.split(key, 3)
    x = jax.random.normal(kx, (B, embedding_dim, L), jnp.float32)
    params = init_rcnn_params(kp, args, embedding_dim, hidden_size)

    ref = jax.block_until_ready(ref_forward(params, x, hidden_size))

    # f32 path.
    out = jax.block_until_ready(rcnn_forward(params, x, hidden_size))
    assert out.shape == (B, hidden_size, L), out.shape
    assert jnp.allclose(out, ref, atol=1e-4, rtol=1e-4), \
        float(jnp.max(jnp.abs(out - ref)))

    # v7x-style recurrence split across the 'parallel' N axis (2 TC blocks).
    out_split = jax.block_until_ready(
        rcnn_forward(params, x, hidden_size, lstm_n_split=2))
    assert jnp.allclose(out_split, ref, atol=1e-4, rtol=1e-4), \
        float(jnp.max(jnp.abs(out_split - ref)))

    # max-pool-over-time path (pool fused into the LSTM kernel epilogue).
    out_p = jax.block_until_ready(
        rcnn_forward(params, x, hidden_size, max_pool_over_time=True))
    ref_p = jnp.max(ref, axis=2)
    assert out_p.shape == (B, hidden_size), out_p.shape
    assert jnp.allclose(out_p, ref_p, atol=1e-4, rtol=1e-4), \
        float(jnp.max(jnp.abs(out_p - ref_p)))

    # bf16-at-the-boundary path (halves activation / gx HBM traffic; f32
    # accumulation + f32 gate math).  Plumbing check with relaxed tolerance.
    out_bf = jax.block_until_ready(
        rcnn_forward(params, x, hidden_size, compute_dtype=jnp.bfloat16))
    assert jnp.allclose(out_bf, ref, atol=1e-1, rtol=1e-1), \
        float(jnp.max(jnp.abs(out_bf - ref)))

    print("KERNEL_OK")
</pallas_src>

<mosaic_0001>
module attributes {stable_mosaic.version = 11 : i64} {
  func.func @_conv_relu_kernel(%arg0: i32, %arg1: memref<2x8x16xf32, #tpu.memory_space<vmem>>, %arg2: memref<40x8xf32, #tpu.memory_space<vmem>>, %arg3: memref<1x8xf32, #tpu.memory_space<vmem>>, %arg4: memref<2x16x8xf32, #tpu.memory_space<vmem>>) attributes {dimension_semantics = [#tpu.dimension_semantics<parallel>], iteration_bounds = array<i64: 1>, scalar_prefetch = 0 : i64, scratch_operands = 0 : i64, tpu.core_type = #tpu.core_type<tc>, window_params = [{transform_indices = @transform_0, window_bounds = array<i64: 2, 8, 16>}, {pipeline_mode = #tpu.pipeline_mode<synchronous>, transform_indices = @transform_1, window_bounds = array<i64: 40, 8>}, {pipeline_mode = #tpu.pipeline_mode<synchronous>, transform_indices = @transform_2, window_bounds = array<i64: 1, 8>}, {transform_indices = @transform_3, window_bounds = array<i64: 2, 16, 8>}]} {
    %c0 = arith.constant 0 : index
    %c0_0 = arith.constant 0 : index
    %c0_1 = arith.constant 0 : index
    %0 = vector.load %arg1[%c0, %c0_0, %c0_1] : memref<2x8x16xf32, #tpu.memory_space<vmem>>, vector<2x8x16xf32>
    %1 = tpu.transpose %0, [0, 2, 1] : vector<2x8x16xf32> -> vector<2x16x8xf32>
    %cst = arith.constant 0.000000e+00 : f32
    %2 = vector.broadcast %cst : f32 to vector<2x4x8xf32>
    %3 = tpu.concatenate %2, %1 in 1 : vector<2x4x8xf32>, vector<2x16x8xf32> -> vector<2x20x8xf32>
    %4 = vector.extract_strided_slice %3 {offsets = [0, 0, 0], sizes = [2, 16, 8], strides = [1, 1, 1]} : vector<2x20x8xf32> to vector<2x16x8xf32>
    %5 = vector.extract_strided_slice %3 {offsets = [0, 1, 0], sizes = [2, 16, 8], strides = [1, 1, 1]} : vector<2x20x8xf32> to vector<2x16x8xf32>
    %6 = vector.extract_strided_slice %3 {offsets = [0, 2, 0], sizes = [2, 16, 8], strides = [1, 1, 1]} : vector<2x20x8xf32> to vector<2x16x8xf32>
    %7 = vector.extract_strided_slice %3 {offsets = [0, 3, 0], sizes = [2, 16, 8], strides = [1, 1, 1]} : vector<2x20x8xf32> to vector<2x16x8xf32>
    %8 = vector.extract_strided_slice %3 {offsets = [0, 4, 0], sizes = [2, 16, 8], strides = [1, 1, 1]} : vector<2x20x8xf32> to vector<2x16x8xf32>
    %9 = tpu.concatenate %4, %5, %6, %7, %8 in 2 : vector<2x16x8xf32>, vector<2x16x8xf32>, vector<2x16x8xf32>, vector<2x16x8xf32>, vector<2x16x8xf32> -> vector<2x16x40xf32>
    %10 = vector.shape_cast %9 : vector<2x16x40xf32> to vector<32x40xf32>
    %c0_2 = arith.constant 0 : index
    %c0_3 = arith.constant 0 : index
    %11 = vector.load %arg2[%c0_2, %c0_3] : memref<40x8xf32, #tpu.memory_space<vmem>>, vector<40x8xf32>
    %cst_4 = arith.constant dense<0.000000e+00> : vector<32x8xf32>
    %12 = tpu.matmul %10, %11, %cst_4 {dimension_numbers = #tpu.dot_dimension_numbers<[1], [0], [0], [1], [0, 0, 1, 1], [], []>} : vector<32x40xf32>, vector<40x8xf32>, vector<32x8xf32> -> vector<32x8xf32>
    %c0_5 = arith.constant 0 : index
    %c0_6 = arith.constant 0 : index
    %13 = vector.load %arg3[%c0_5, %c0_6] : memref<1x8xf32, #tpu.memory_space<vmem>>, vector<1x8xf32>
    %14 = vector.broadcast %13 : vector<1x8xf32> to vector<32x8xf32>
    %15 = arith.addf %12, %14 : vector<32x8xf32>
    %cst_7 = arith.constant 0.000000e+00 : f32
    %16 = vector.broadcast %cst_7 : f32 to vector<32x8xf32>
    %17 = arith.maximumf %15, %16 : vector<32x8xf32>
    %18 = vector.shape_cast %17 : vector<32x8xf32> to vector<2x16x8xf32>
    %c0_8 = arith.constant 0 : index
    %c0_9 = arith.constant 0 : index
    %c0_10 = arith.constant 0 : index
    %19 = vector.load %arg4[%c0_8, %c0_9, %c0_10] : memref<2x16x8xf32, #tpu.memory_space<vmem>>, vector<2x16x8xf32>
    tpu.vector_store %arg4[%c0_8, %c0_9, %c0_10], %18 {strides = array<i32>} : memref<2x16x8xf32, #tpu.memory_space<vmem>>, vector<2x16x8xf32>,
    return
  }
  func.func @transform_0(%arg0: i32) -> (i32, i32, i32) {
    %c0_i32 = arith.constant 0 : i32
    %c0_i32_0 = arith.constant 0 : i32
    %c0_i32_1 = arith.constant 0 : i32
    return %arg0, %c0_i32, %c0_i32_0 : i32, i32, i32
  }
  func.func @transform_1(%arg0: i32) -> (i32, i32) {
    %c0_i32 = arith.constant 0 : i32
    %c0_i32_0 = arith.constant 0 : i32
    %c0_i32_1 = arith.constant 0 : i32
    return %c0_i32, %c0_i32_0 : i32, i32
  }
  func.func @transform_2(%arg0: i32) -> (i32, i32) {
    %c0_i32 = arith.constant 0 : i32
    %c0_i32_0 = arith.constant 0 : i32
    %c0_i32_1 = arith.constant 0 : i32
    return %c0_i32, %c0_i32_0 : i32, i32
  }
  func.func @transform_3(%arg0: i32) -> (i32, i32, i32) {
    %c0_i32 = arith.constant 0 : i32
    %c0_i32_0 = arith.constant 0 : i32
    %c0_i32_1 = arith.constant 0 : i32
    return %arg0, %c0_i32, %c0_i32_0 : i32, i32, i32
  }
}

</mosaic_0001>

<bundles_post_ra>
// kernel: tpu_custom_call.1
= control target key start
LH: loop header
LB: loop body
LE: loop exit
PB: predicated region body
PF: predicated region fallthrough
CT: control target
= control target key end

     0   :  { %vm84_vm0 = vcmask 1043456   ;;  %vm99_vm1 = vcmask 1046528   ;;  %s382_s16 = smov 32   ;;  %vm122_vm2 = vcmask 1045504   ;;  %s383_s17 = smov 16   ;;  %vm145_vm3 = vcmask 1044480   ;;  %s531_s0 = inlined_call_operand.vmem [shape: f32[2,8,16], index: 0, kind: input, shape index: {}]   ;;  %s532_s1 = inlined_call_operand.vmem [shape: f32[40,8], index: 1, kind: input, shape index: {}]   ;;  %s533_s2 = inlined_call_operand.vmem [shape: f32[1,8], index: 2, kind: input, shape index: {}]   ;;  %s534_s3 = inlined_call_operand.vmem [shape: f32[2,16,8], index: 3, kind: output, shape index: {}]  }
   0x1   :  { %v14_v0 = vld [vmem:[%s531_s0] sm:$0xff]  ;;  %v15_v1 = vld [vmem:[%s531_s0 + $0x8] sm:$0xff]  ;;  %s381_s0 = smov 8   ;;  %s384_s22 = smov 24   ;;  %v212_v45 = vld [vmem:[%s532_s1 + $0x10] sm:$0xff]  ;;  %vm190_vm4 = vcmask 64512  }
   0x2   :  { %16 = vxpose.xlu0.b32.start.end [1/1] (short) (narrow) %v14_v0, 16  ;;  %v210_v41 = vld [vmem:[%s532_s1] sm:$0xff]  ;;  %v211_v42 = vld [vmem:[%s532_s1 + $0x8] sm:$0xff]  ;;  %v213_v46 = vld [vmem:[%s532_s1 + $0x18] sm:$0xff]  ;;  %vm195_vm5 = vcmask 130048   ;;  %vm200_vm6 = vcmask 195584  }
   0x3   :  { %v362_v43 = vpack.c.bf16 %v211_v42, %v210_v41  ;;  %v366_v49 = vpack.c.bf16 %v213_v46, %v212_v45  ;;  %v214_v50 = vld [vmem:[%s532_s1 + $0x20] sm:$0xff]  ;;  %vm222_vm7 = vcmask 326656   ;;  %vm205_vm8 = vcmask 261120  }
   0x5   :  { %370 = vmatprep.subr.bf16.mxu1 %v362_v43  ;;  %363 = vmatprep.subr.bf16.mxu0 %v362_v43 }
   0x6   :  { %373 = vmatpush3.bf16.msra.mxu1 %v362_v43  ;;  %365 = vmatpush3.bf16.msra.mxu0 %v362_v43 }
   0x7   :  { %48 = vxpose.xlu0.b32.start.end [1/1] (short) (narrow) %v15_v1, 16  ;;  %371 = vmatprep.subr.bf16.mxu1 %v366_v49 }
   0x8   :  { %367 = vmatprep.subr.bf16.mxu0 %v366_v49 }
   0xa   :  { %374 = vmatpush3.bf16.msra.mxu1 %v366_v49  ;;  %369 = vmatpush3.bf16.msra.mxu0 %v366_v49 }
   0xb   :  { %372 = vmatprep.subr.mxu1 %v214_v50  ;;  %354 = vmatprep.subr.mxu0 %v214_v50 }
   0xe   :  { %375 = vmatpush3.msra.mxu1 %v214_v50  ;;  %355 = vmatpush3.msra.mxu0 %v214_v50 }
  0x82   :  { %v32_v2 = vpop.trf.xlu0 }
  0x83   :  { %v85_v3 = vrot.slane %v32_v2, 4 }
  0x85   :  { %v412_v5 = vsel %vm84_vm0, 0.0, %v85_v3 }
  0x86   :  { %v33_v4 = vpop.trf.xlu0  ;;  %v100_v9 = vrot.slane %v412_v5, 1  ;;  %v123_v28 = vrot.slane %v412_v5, 2  ;;  %v146_v38 = vrot.slane %v412_v5, 3  ;;  %v168_v55 = vrot.slane %v412_v5, 4 }
  0x87   :  { %v414_v6 = vrot.slane %v33_v4, 4 }
  0x89   :  { %v418_v7 = vsel %vm84_vm0, %v85_v3, %v414_v6  ;;  %v103_v20 = vrot.slane %v414_v6, 1  ;;  %v126_v33 = vrot.slane %v414_v6, 2  ;;  %v149_v48 = vrot.slane %v414_v6, 3 }
  0x8a   :  { %v64_v8 = vpop.trf.xlu0  ;;  %v101_v10 = vrot.slane %v418_v7, 1  ;;  %v124_v27 = vrot.slane %v418_v7, 2  ;;  %v147_v37 = vrot.slane %v418_v7, 3  ;;  %v169_v54 = vrot.slane %v418_v7, 4 }
  0x8b   :  { %v88_v11 = vrot.slane %v64_v8, 4  ;;  %v171_v59 = vrot.slane %v414_v6, 4 }
  0x8c   :  { %v102_v12 = vsel %vm99_vm1, %v100_v9, %v101_v10  ;;  %v104_v26 = vsel %vm99_vm1, %v101_v10, %v103_v20  ;;  %v125_v29 = vsel %vm122_vm2, %v123_v28, %v124_v27  ;;  %v127_v34 = vsel %vm122_vm2, %v124_v27, %v126_v33 }
  0x8d   :  { %110 = vrot.lane.b32.xlu1 %v102_v12, %s381_s0  ;;  %v424_v14 = vsel %vm84_vm0, 0.0, %v88_v11  ;;  %v148_v39 = vsel %vm145_vm3, %v146_v38, %v147_v37  ;;  %v150_v51 = vsel %vm145_vm3, %v147_v37, %v149_v48  ;;  %v170_v56 = vsel %vm84_vm0, %v168_v55, %v169_v54 }
  0x8e   :  { %v65_v13 = vpop.trf.xlu0  ;;  %v105_v19 = vrot.slane %v424_v14, 1  ;;  %v128_v31 = vrot.slane %v424_v14, 2  ;;  %v151_v44 = vrot.slane %v424_v14, 3  ;;  %v173_v57 = vrot.slane %v424_v14, 4 }
  0x8f   :  { %v426_v15 = vrot.slane %v65_v13, 4  ;;  %v172_v60 = vsel %vm84_vm0, %v169_v54, %v171_v59 }
  0x91   :  { %v430_v16 = vsel %vm84_vm0, %v88_v11, %v426_v15  ;;  %v108_v17 = vrot.slane %v426_v15, 1  ;;  %v176_v24 = vrot.slane %v426_v15, 4  ;;  %v131_v35 = vrot.slane %v426_v15, 2 }
  0x92   :  { %v106_v18 = vrot.slane %v430_v16, 1  ;;  %v174_v23 = vrot.slane %v430_v16, 4  ;;  %v129_v30 = vrot.slane %v430_v16, 2  ;;  %v152_v40 = vrot.slane %v430_v16, 3 }
  0x93   :  { %v154_v52 = vrot.slane %v426_v15, 3 }
  0x94   :  { %v109_v21 = vsel %vm99_vm1, %v106_v18, %v108_v17  ;;  %v107_v22 = vsel %vm99_vm1, %v105_v19, %v106_v18  ;;  %v177_v25 = vsel %vm84_vm0, %v174_v23, %v176_v24  ;;  %v130_v32 = vsel %vm122_vm2, %v128_v31, %v129_v30 }
  0x95   :  { %116 = vrot.lane.b32.xlu0 %v109_v21, %s381_s0  ;;  %114 = vrot.lane.b32.xlu1 %v107_v22, %s381_s0  ;;  %v132_v36 = vsel %vm122_vm2, %v129_v30, %v131_v35  ;;  %v153_v47 = vsel %vm145_vm3, %v151_v44, %v152_v40  ;;  %v155_v53 = vsel %vm145_vm3, %v152_v40, %v154_v52  ;;  %v332_v30 = vld [vmem:[%s533_s2] ss:$0 sm:$0xff] }
  0x96   :  { %v175_v58 = vsel %vm84_vm0, %v173_v57, %v174_v23 }
  0x99   :  { %184 = vrot.lane.b32.xlu0 %v177_v25, %s382_s16  ;;  %112 = vrot.lane.b32.xlu1 %v104_v26, %s381_s0 }
  0x9d   :  { %133 = vrot.lane.b32.xlu1 %v125_v29, %s383_s17 }
  0xa1   :  { %137 = vrot.lane.b32.xlu1 %v130_v32, %s383_s17 }
  0xa5   :  { %135 = vrot.lane.b32.xlu1 %v127_v34, %s383_s17 }
  0xa9   :  { %139 = vrot.lane.b32.xlu1 %v132_v36, %s383_s17 }
  0xad   :  { %156 = vrot.lane.b32.xlu1 %v148_v39, %s384_s22 }
  0xb1   :  { %160 = vrot.lane.b32.xlu1 %v153_v47, %s384_s22 }
  0xb5   :  { %158 = vrot.lane.b32.xlu1 %v150_v51, %s384_s22 }
  0xb9   :  { %162 = vrot.lane.b32.xlu1 %v155_v53, %s384_s22 }
  0xbd   :  { %178 = vrot.lane.b32.xlu1 %v170_v56, %s382_s16 }
  0xc1   :  { %182 = vrot.lane.b32.xlu1 %v175_v58, %s382_s16 }
  0xc5   :  { %180 = vrot.lane.b32.xlu1 %v172_v60, %s382_s16 }
  0xff   :  { %v111_v61 = vpop.permute.xlu1 %110 }
 0x100   :  { %v191_v6 = vsel %vm190_vm4, %v412_v5, %v111_v61 }
 0x107   :  { %v115_v62 = vpop.permute.xlu1 %114  ;;  %v117_v11 = vpop.permute.xlu0 %116 }
 0x108   :  { %v194_v17 = vsel %vm190_vm4, %v430_v16, %v117_v11  ;;  %v193_v19 = vsel %vm190_vm4, %v424_v14, %v115_v62 }
 0x10b   :  { %v113_v63 = vpop.permute.xlu1 %112  ;;  %v185_v24 = vpop.permute.xlu0 %184 }
 0x10c   :  { %v192_v16 = vsel %vm190_vm4, %v418_v7, %v113_v63 }
 0x10f   :  { %v134_v0 = vpop.permute.xlu1 %133 }
 0x110   :  { %v196_v12 = vsel %vm195_vm5, %v191_v6, %v134_v0 }
 0x113   :  { %v138_v1 = vpop.permute.xlu1 %137 }
 0x114   :  { %v198_v5 = vsel %vm195_vm5, %v193_v19, %v138_v1 }
 0x117   :  { %v136_v2 = vpop.permute.xlu1 %135 }
 0x118   :  { %v197_v26 = vsel %vm195_vm5, %v192_v16, %v136_v2 }
 0x11b   :  { %v140_v3 = vpop.permute.xlu1 %139 }
 0x11c   :  { %v199_v20 = vsel %vm195_vm5, %v194_v17, %v140_v3 }
 0x11f   :  { %v157_v4 = vpop.permute.xlu1 %156 }
 0x120   :  { %v201_v13 = vsel %vm200_vm6, %v196_v12, %v157_v4 }
 0x123   :  { %v161_v8 = vpop.permute.xlu1 %160 }
 0x124   :  { %v203_v22 = vsel %vm200_vm6, %v198_v5, %v161_v8 }
 0x127   :  { %v159_v9 = vpop.permute.xlu1 %158 }
 0x128   :  { %v202_v27 = vsel %vm200_vm6, %v197_v26, %v159_v9 }
 0x12b   :  { %v163_v10 = vpop.permute.xlu1 %162 }
 0x12c   :  { %v204_v21 = vsel %vm200_vm6, %v199_v20, %v163_v10 }
 0x12d   :  { %v209_v14 = vsel %vm205_vm8, %v204_v21, %v185_v24 }
 0x12f   :  { %v179_v15 = vpop.permute.xlu1 %178 }
 0x130   :  { %v206_v18 = vsel %vm205_vm8, %v201_v13, %v179_v15 }
 0x131   :  { %356 = vmatprep.mubr.msk.f32.mxu0 %vm222_vm7, %v206_v18 }
 0x133   :  { %v183_v23 = vpop.permute.xlu1 %182 }
 0x134   :  { %v208_v25 = vsel %vm205_vm8, %v203_v22, %v183_v23 }
 0x135   :  { %359 = vmatprep.mubr.msk.f32.mxu1 %vm222_vm7, %v208_v25 }
 0x136   :  { %360 = vmatmul.mubr.msk.f32.vlgmr.msra.gmra.mrb[0].mxu1 %vm222_vm7, %v209_v14 }
 0x137   :  { %v181_v28 = vpop.permute.xlu1 %180 }
 0x138   :  { %v207_v29 = vsel %vm205_vm8, %v202_v27, %v181_v28 }
 0x139   :  { %357 = vmatmul.mubr.msk.f32.vlgmr.msra.gmra.mrb[0].mxu0 %vm222_vm7, %v207_v29 }
 0x209   :  { %v361_v7 = vpop.f32.mrb[0].mxu1 }
 0x20a   :  { %v317_v31 = vadd.f32 %v361_v7, %v332_v30  ;;  %v311_v32 = vpop.f32.mrb[1].mxu1 }
 0x20b   :  { %v312_v33 = vadd.f32 %v332_v30, %v311_v32 }
 0x20c   :  { %v323_v34 = vmax.f32 %v317_v31, 0.0  ;;  %v358_v35 = vpop.f32.mrb[0].mxu0 }
 0x20d   :  { %v322_v36 = vmax.f32 %v312_v33, 0.0  ;;  %v307_v37 = vadd.f32 %v358_v35, %v332_v30  ;;  %v301_v38 = vpop.f32.mrb[1].mxu0 }
 0x20e   :  { %327 = vst.msk [vmem:[%s534_s3 + $0x18] sm:$0xff] %vm190_vm4, %v323_v34  ;;  %v302_v39 = vadd.f32 %v332_v30, %v301_v38 }
 0x20f   :  { %326 = vst.msk [vmem:[%s534_s3 + $0x10] sm:$0xff] %vm190_vm4, %v322_v36  ;;  %v321_v40 = vmax.f32 %v307_v37, 0.0 }
 0x210   :  { %v320_v41 = vmax.f32 %v302_v39, 0.0 }
 0x211   :  { %325 = vst.msk [vmem:[%s534_s3 + $0x8] sm:$0xff] %vm190_vm4, %v321_v40 }
 0x212   :  { %324 = vst.msk [vmem:[%s534_s3] sm:$0xff] %vm190_vm4, %v320_v41 }

</bundles_post_ra>
